<compile_context>
chip_gen: v7x
topology: tpu7x:2x2x1
jax: 0.10.0
libtpu: 0.0.40
codegen_flags: <defaults>
</compile_context>

<pallas_src>
import functools

import numpy as np
import jax
import jax.numpy as jnp
from jax.experimental import pallas as pl
from jax.experimental.pallas import tpu as pltpu


def _bilinear_matrix(n: int) -> jnp.ndarray:
    """Interpolation matrix A (2n x n) for 2x bilinear upsample,
    align_corners=False (PyTorch semantics: src = (dst+0.5)/2 - 0.5, clamp<0)."""
    m = 2 * n
    a = np.zeros((m, n), dtype=np.float32)
    for oi in range(m):
        src = (oi + 0.5) / 2.0 - 0.5
        if src < 0.0:
            src = 0.0
        i0 = min(int(np.floor(src)), n - 1)
        frac = src - i0
        i1 = min(i0 + 1, n - 1)
        a[oi, i0] += 1.0 - frac
        a[oi, i1] += frac
    return jnp.asarray(a)


def _upsample_kernel(ac_ref, x_ref, o_ref, *, smooth: bool, mxu_dtype):
    # ac_ref: (W, 2W) banded column-interp matrix (f32 or bf16)
    # x_ref:  (P, H, W) input dtype
    # o_ref:  (P, 2H, 2W) input dtype
    p, h, w = x_ref.shape
    x = x_ref[...].astype(jnp.float32)          # on-chip math in f32

    if smooth:
        # 3x3 [[1,2,1],[2,4,2],[1,2,1]]/16 conv, replication pad, separable.
        xl = jnp.concatenate([x[:, :, :1], x[:, :, :-1]], axis=2)   # col j-1 (clamped)
        xr = jnp.concatenate([x[:, :, 1:], x[:, :, -1:]], axis=2)   # col j+1 (clamped)
        row = xl + 2.0 * x + xr
        ru = jnp.concatenate([row[:, :1, :], row[:, :-1, :]], axis=1)   # row i-1
        rd = jnp.concatenate([row[:, 1:, :], row[:, -1:, :]], axis=1)   # row i+1
        s = (ru + 2.0 * row + rd) * (1.0 / 16.0)                        # (P, H, W)
    else:
        s = x

    # --- width (lane) upsample: ONE flattened 2D matmul, no broadcasts -------
    # (free reshape when H % 8 == 0; single RHS push, M = P*H)
    s_flat = s.reshape(p * h, w).astype(mxu_dtype)
    t = jnp.dot(s_flat, ac_ref[...], preferred_element_type=jnp.float32)
    t = t.reshape(p, h, 2 * w)                                          # (P, H, 2W)

    # --- height (sublane) upsample: banded 0.25/0.75 shift-add on the VPU ----
    # even out-row 2i   = 0.25*t[i-1] + 0.75*t[i]   (edge-clamped at i=0)
    # odd  out-row 2i+1 = 0.75*t[i]   + 0.25*t[i+1] (edge-clamped at i=H-1)
    t_prev = jnp.concatenate([t[:, :1, :], t[:, :-1, :]], axis=1)
    t_next = jnp.concatenate([t[:, 1:, :], t[:, -1:, :]], axis=1)
    even = 0.25 * t_prev + 0.75 * t
    odd = 0.75 * t + 0.25 * t_next

    # Interleave via sublane-strided stores into the output block.
    o_ref[:, pl.ds(0, h, 2), :] = even.astype(o_ref.dtype)
    o_ref[:, pl.ds(1, h, 2), :] = odd.astype(o_ref.dtype)


def upsample(x: jnp.ndarray, smooth: bool = True) -> jnp.ndarray:
    """Equivalent of Upsample(smooth=...).forward for NCHW input."""
    b, c, h, w = x.shape
    bc = b * c
    xf = x.reshape(bc, h, w)                     # metadata-only; native dtype

    itemsize = jnp.dtype(x.dtype).itemsize

    # --- generation-aware VMEM budget ---------------------------------------
    try:
        vmem_cap = int(pltpu.get_tpu_info().vmem_capacity_bytes)
    except Exception:
        vmem_cap = 64 * 1024 * 1024              # conservative (v7x-class)
    vmem_limit = min((vmem_cap * 3) // 4, 112 * 1024 * 1024)

    # per-plane bytes: double-buffered HBM blocks (in: HW, out: 4HW) + ~14 f32
    # temporaries (x, stencil shifts, s, t, t_prev/next, even, odd).
    bytes_per_plane = 2 * (1 + 4) * h * w * itemsize + 14 * h * w * 4
    usable = max(bytes_per_plane, (vmem_limit * 3) // 5)   # keep headroom
    p = max(1, min(bc, usable // bytes_per_plane))

    # Split the grid across TensorCores only where megacore sharding exists.
    try:
        dual_core = "v7" in jax.devices()[0].device_kind.lower()
    except Exception:
        dual_core = True
    if dual_core and bc >= 2:
        p = max(1, min(p, pl.cdiv(bc, 2)))

    g = pl.cdiv(bc, p)   # partial final block handled by Pallas write-masking

    mxu_dtype = jnp.bfloat16 if x.dtype == jnp.bfloat16 else jnp.float32
    a_colT = _bilinear_matrix(w).T.astype(mxu_dtype)   # (W, 2W), exact in bf16

    kernel = functools.partial(_upsample_kernel, smooth=smooth, mxu_dtype=mxu_dtype)

    flops_per_plane = (8 * h * w if smooth else 0) + 4 * h * w * w + 12 * h * w
    cost = pl.CostEstimate(
        flops=int(bc * flops_per_plane),
        transcendentals=0,
        bytes_accessed=int(bc * h * w * itemsize * 5 + a_colT.size * a_colT.dtype.itemsize),
    )

    out = pl.pallas_call(
        kernel,
        out_shape=jax.ShapeDtypeStruct((bc, 2 * h, 2 * w), x.dtype),
        grid=(g,),
        in_specs=[
            pl.BlockSpec((w, 2 * w), lambda i: (0, 0)),     # constant interp matrix
            pl.BlockSpec((p, h, w), lambda i: (i, 0, 0)),   # P planes per step
        ],
        out_specs=pl.BlockSpec((p, 2 * h, 2 * w), lambda i: (i, 0, 0)),
        compiler_params=pltpu.CompilerParams(
            dimension_semantics=("parallel",),
            vmem_limit_bytes=int(vmem_limit),
        ),
        cost_estimate=cost,
    )(a_colT, xf)

    return out.reshape(b, c, 2 * h, 2 * w)


def _reference(x: jnp.ndarray, smooth: bool = True) -> jnp.ndarray:
    """Pure-JAX reference mirroring the PyTorch module (pad+3x3 conv, bilinear 2x)."""
    b, c, h, w = x.shape
    xf = x.reshape(b * c, h, w).astype(jnp.float32)
    if smooth:
        xp = jnp.pad(xf, ((0, 0), (1, 1), (1, 1)), mode='edge')
        k = jnp.array([[1, 2, 1], [2, 4, 2], [1, 2, 1]], jnp.float32) / 16.0
        s = sum(k[di, dj] * xp[:, di:di + h, dj:dj + w]
                for di in range(3) for dj in range(3))
    else:
        s = xf
    ar = _bilinear_matrix(h)   # (2H, H)
    ac = _bilinear_matrix(w)   # (2W, W)
    t = jnp.einsum('rh,phw->prw', ar, s)
    out = jnp.einsum('prw,cw->prc', t, ac)
    return out.reshape(b, c, 2 * h, 2 * w).astype(x.dtype)


if __name__ == "__main__":
    key = jax.random.PRNGKey(0)
    x = jax.random.normal(key, (2, 4, 16, 16), dtype=jnp.float32)

    # smooth=True (default module behavior)
    y = upsample(x, smooth=True)
    y = jax.block_until_ready(y)
    assert y.shape == (2, 4, 32, 32), y.shape
    assert y.dtype == x.dtype
    y_ref = _reference(x, smooth=True)
    assert bool(jnp.allclose(y, y_ref, atol=1e-4, rtol=1e-4)), \
        float(jnp.max(jnp.abs(y - y_ref)))

    # smooth=False path
    y2 = upsample(x, smooth=False)
    y2 = jax.block_until_ready(y2)
    y2_ref = _reference(x, smooth=False)
    assert bool(jnp.allclose(y2, y2_ref, atol=1e-4, rtol=1e-4)), \
        float(jnp.max(jnp.abs(y2 - y2_ref)))

    print("KERNEL_OK")
</pallas_src>

<mosaic_0001>
module attributes {stable_mosaic.version = 11 : i64} {
  func.func @_upsample_kernel(%arg0: i32, %arg1: memref<16x32xf32, #tpu.memory_space<vmem>>, %arg2: memref<8x16x16xf32, #tpu.memory_space<vmem>>, %arg3: memref<8x32x32xf32, #tpu.memory_space<vmem>>) attributes {dimension_semantics = [#tpu.dimension_semantics<parallel>], iteration_bounds = array<i64: 1>, scalar_prefetch = 0 : i64, scratch_operands = 0 : i64, tpu.core_type = #tpu.core_type<tc>, window_params = [{pipeline_mode = #tpu.pipeline_mode<synchronous>, transform_indices = @transform_0, window_bounds = array<i64: 16, 32>}, {transform_indices = @transform_1, window_bounds = array<i64: 8, 16, 16>}, {transform_indices = @transform_2, window_bounds = array<i64: 8, 32, 32>}]} {
    %c0 = arith.constant 0 : index
    %c0_0 = arith.constant 0 : index
    %c0_1 = arith.constant 0 : index
    %0 = vector.load %arg2[%c0, %c0_0, %c0_1] : memref<8x16x16xf32, #tpu.memory_space<vmem>>, vector<8x16x16xf32>
    %1 = vector.extract_strided_slice %0 {offsets = [0, 0, 0], sizes = [8, 16, 1], strides = [1, 1, 1]} : vector<8x16x16xf32> to vector<8x16x1xf32>
    %2 = vector.extract_strided_slice %0 {offsets = [0, 0, 0], sizes = [8, 16, 15], strides = [1, 1, 1]} : vector<8x16x16xf32> to vector<8x16x15xf32>
    %3 = tpu.concatenate %1, %2 in 2 : vector<8x16x1xf32>, vector<8x16x15xf32> -> vector<8x16x16xf32>
    %4 = vector.extract_strided_slice %0 {offsets = [0, 0, 1], sizes = [8, 16, 15], strides = [1, 1, 1]} : vector<8x16x16xf32> to vector<8x16x15xf32>
    %5 = vector.extract_strided_slice %0 {offsets = [0, 0, 15], sizes = [8, 16, 1], strides = [1, 1, 1]} : vector<8x16x16xf32> to vector<8x16x1xf32>
    %6 = tpu.concatenate %4, %5 in 2 : vector<8x16x15xf32>, vector<8x16x1xf32> -> vector<8x16x16xf32>
    %cst = arith.constant 2.000000e+00 : f32
    %7 = vector.broadcast %cst : f32 to vector<8x16x16xf32>
    %8 = arith.mulf %7, %0 : vector<8x16x16xf32>
    %9 = arith.addf %3, %8 : vector<8x16x16xf32>
    %10 = arith.addf %9, %6 : vector<8x16x16xf32>
    %11 = vector.extract_strided_slice %10 {offsets = [0, 0, 0], sizes = [8, 1, 16], strides = [1, 1, 1]} : vector<8x16x16xf32> to vector<8x1x16xf32>
    %12 = vector.extract_strided_slice %10 {offsets = [0, 0, 0], sizes = [8, 15, 16], strides = [1, 1, 1]} : vector<8x16x16xf32> to vector<8x15x16xf32>
    %13 = tpu.concatenate %11, %12 in 1 : vector<8x1x16xf32>, vector<8x15x16xf32> -> vector<8x16x16xf32>
    %14 = vector.extract_strided_slice %10 {offsets = [0, 1, 0], sizes = [8, 15, 16], strides = [1, 1, 1]} : vector<8x16x16xf32> to vector<8x15x16xf32>
    %15 = vector.extract_strided_slice %10 {offsets = [0, 15, 0], sizes = [8, 1, 16], strides = [1, 1, 1]} : vector<8x16x16xf32> to vector<8x1x16xf32>
    %16 = tpu.concatenate %14, %15 in 1 : vector<8x15x16xf32>, vector<8x1x16xf32> -> vector<8x16x16xf32>
    %cst_2 = arith.constant 2.000000e+00 : f32
    %17 = vector.broadcast %cst_2 : f32 to vector<8x16x16xf32>
    %18 = arith.mulf %17, %10 : vector<8x16x16xf32>
    %19 = arith.addf %13, %18 : vector<8x16x16xf32>
    %20 = arith.addf %19, %16 : vector<8x16x16xf32>
    %cst_3 = arith.constant 6.250000e-02 : f32
    %21 = vector.broadcast %cst_3 : f32 to vector<8x16x16xf32>
    %22 = arith.mulf %20, %21 : vector<8x16x16xf32>
    %23 = vector.shape_cast %22 : vector<8x16x16xf32> to vector<128x16xf32>
    %c0_4 = arith.constant 0 : index
    %c0_5 = arith.constant 0 : index
    %24 = vector.load %arg1[%c0_4, %c0_5] : memref<16x32xf32, #tpu.memory_space<vmem>>, vector<16x32xf32>
    %cst_6 = arith.constant dense<0.000000e+00> : vector<128x32xf32>
    %25 = tpu.matmul %23, %24, %cst_6 {dimension_numbers = #tpu.dot_dimension_numbers<[1], [0], [0], [1], [0, 0, 1, 1], [], []>} : vector<128x16xf32>, vector<16x32xf32>, vector<128x32xf32> -> vector<128x32xf32>
    %26 = vector.shape_cast %25 : vector<128x32xf32> to vector<8x16x32xf32>
    %27 = vector.extract_strided_slice %26 {offsets = [0, 0, 0], sizes = [8, 1, 32], strides = [1, 1, 1]} : vector<8x16x32xf32> to vector<8x1x32xf32>
    %28 = vector.extract_strided_slice %26 {offsets = [0, 0, 0], sizes = [8, 15, 32], strides = [1, 1, 1]} : vector<8x16x32xf32> to vector<8x15x32xf32>
    %29 = tpu.concatenate %27, %28 in 1 : vector<8x1x32xf32>, vector<8x15x32xf32> -> vector<8x16x32xf32>
    %30 = vector.extract_strided_slice %26 {offsets = [0, 1, 0], sizes = [8, 15, 32], strides = [1, 1, 1]} : vector<8x16x32xf32> to vector<8x15x32xf32>
    %31 = vector.extract_strided_slice %26 {offsets = [0, 15, 0], sizes = [8, 1, 32], strides = [1, 1, 1]} : vector<8x16x32xf32> to vector<8x1x32xf32>
    %32 = tpu.concatenate %30, %31 in 1 : vector<8x15x32xf32>, vector<8x1x32xf32> -> vector<8x16x32xf32>
    %cst_7 = arith.constant 2.500000e-01 : f32
    %33 = vector.broadcast %cst_7 : f32 to vector<8x16x32xf32>
    %34 = arith.mulf %33, %29 : vector<8x16x32xf32>
    %cst_8 = arith.constant 7.500000e-01 : f32
    %35 = vector.broadcast %cst_8 : f32 to vector<8x16x32xf32>
    %36 = arith.mulf %35, %26 : vector<8x16x32xf32>
    %37 = arith.addf %34, %36 : vector<8x16x32xf32>
    %cst_9 = arith.constant 7.500000e-01 : f32
    %38 = vector.broadcast %cst_9 : f32 to vector<8x16x32xf32>
    %39 = arith.mulf %38, %26 : vector<8x16x32xf32>
    %cst_10 = arith.constant 2.500000e-01 : f32
    %40 = vector.broadcast %cst_10 : f32 to vector<8x16x32xf32>
    %41 = arith.mulf %40, %32 : vector<8x16x32xf32>
    %42 = arith.addf %39, %41 : vector<8x16x32xf32>
    %c0_11 = arith.constant 0 : index
    %c0_12 = arith.constant 0 : index
    %c0_13 = arith.constant 0 : index
    %43 = tpu.strided_load %arg3[%c0_11, %c0_12, %c0_13] {strides = array<i32: 1, 2, 1>} : memref<8x32x32xf32, #tpu.memory_space<vmem>>, vector<8x16x32xf32>
    tpu.strided_store %arg3[%c0_11, %c0_12, %c0_13], %37 {strides = array<i32: 1, 2, 1>} : memref<8x32x32xf32, #tpu.memory_space<vmem>>, vector<8x16x32xf32>
    %c0_14 = arith.constant 0 : index
    %c1 = arith.constant 1 : index
    %c0_15 = arith.constant 0 : index
    %44 = tpu.strided_load %arg3[%c0_14, %c1, %c0_15] {strides = array<i32: 1, 2, 1>} : memref<8x32x32xf32, #tpu.memory_space<vmem>>, vector<8x16x32xf32>
    tpu.strided_store %arg3[%c0_14, %c1, %c0_15], %42 {strides = array<i32: 1, 2, 1>} : memref<8x32x32xf32, #tpu.memory_space<vmem>>, vector<8x16x32xf32>
    return
  }
  func.func @transform_0(%arg0: i32) -> (i32, i32) {
    %c0_i32 = arith.constant 0 : i32
    %c0_i32_0 = arith.constant 0 : i32
    %c0_i32_1 = arith.constant 0 : i32
    return %c0_i32, %c0_i32_0 : i32, i32
  }
  func.func @transform_1(%arg0: i32) -> (i32, i32, i32) {
    %c0_i32 = arith.constant 0 : i32
    %c0_i32_0 = arith.constant 0 : i32
    %c0_i32_1 = arith.constant 0 : i32
    return %arg0, %c0_i32, %c0_i32_0 : i32, i32, i32
  }
  func.func @transform_2(%arg0: i32) -> (i32, i32, i32) {
    %c0_i32 = arith.constant 0 : i32
    %c0_i32_0 = arith.constant 0 : i32
    %c0_i32_1 = arith.constant 0 : i32
    return %arg0, %c0_i32, %c0_i32_0 : i32, i32, i32
  }
}

</mosaic_0001>

<bundles_post_ra>
// kernel: tpu_custom_call.1
= control target key start
LH: loop header
LB: loop body
LE: loop exit
PB: predicated region body
PF: predicated region fallthrough
CT: control target
= control target key end

     0   :  { %7 = vsyncpa [#allocation3], 0  ;;  %s1367_s0 = inlined_call_operand.hbm [shape: f32[16,32], index: 0, kind: input, shape index: {}]   ;;  %s1368_s1 = inlined_call_operand.hbm [shape: f32[8,16,16], index: 1, kind: input, shape index: {}]   ;;  %s1369_s2 = inlined_call_operand.hbm [shape: f32[8,32,32], index: 2, kind: output, shape index: {}]  }
   0x1   :  { %8 = vsyncpa [#allocation6], 0 }
   0x2   :  { %9 = vsyncpa [#allocation4], 0  ;;  %s1044_s9 = smov [#allocation2]   ;;  %s972_s13 = scalar_lea.hbm %s1367_s0, 256 }
   0x3   :  { %s15_s10 = sshll.u32 %s1044_s9, 4  ;;  %p973_p0 = scmp.ne.s32.totalorder %s1367_s0, %s972_s13  ;;  %s16_s10 = int_to_ptr.vmem [resolvable:$true] %s15_s10 }
   0x4   :  { %p976_p1 = scmp.lt.u32.totalorder %s972_s13, %s1367_s0 }
   0x6   :  { %p978_p2 = pnand %p976_p1, %p973_p0 }
   0x8   :  { %981 = shalt.err (!%p978_p2)
}
   0x9   :  { %s982_s18 = scalar_lea.vmem %s16_s10, 256  ;;  %p987_p4 = scmp.lt.s32.totalorder %s16_s10, %s16_s10 }
   0xa   :  { %p983_p3 = scmp.ne.s32.totalorder %s16_s10, %s982_s18  ;;  %p988_p5 = scmp.lt.s32.totalorder %s982_s18, %s982_s18 }
   0xc   :  { %p989_p6 = por %p988_p5, %p987_p4 }
   0xe   :  { %p990_p7 = pnand %p989_p6, %p983_p3 }
  0x10   :  { %993 = shalt.err (!%p990_p7)
}
  0x11   :  { %s1045_s19 = smov 128   ;;  %s1046_s20 = smov 8  }
  0x12   :  { %21 = dma.hbm_to_vmem [thread:$0]  %s1367_s0, 256, %s16_s10, [#allocation3], %s1045_s19, %s1045_s19, %s1046_s20  }
  0x13   :  { %s1047_s23 = smov [#allocation5]   ;;  %s994_s27 = scalar_lea.hbm %s1368_s1, 2048 }
  0x14   :  { %s27_s24 = sshll.u32 %s1047_s23, 4  ;;  %p995_p8 = scmp.ne.s32.totalorder %s1368_s1, %s994_s27  ;;  %s28_s24 = int_to_ptr.vmem [resolvable:$true] %s27_s24 }
  0x15   :  { %p998_p9 = scmp.lt.u32.totalorder %s994_s27, %s1368_s1 }
  0x17   :  { %p1000_p10 = pnand %p998_p9, %p995_p8 }
  0x19   :  { %1003 = shalt.err (!%p1000_p10)
}
  0x1a   :  { %s1004_s4 = scalar_lea.vmem %s28_s24, 2048  ;;  %p1009_p12 = scmp.lt.s32.totalorder %s28_s24, %s28_s24 }
  0x1b   :  { %p1005_p11 = scmp.ne.s32.totalorder %s28_s24, %s1004_s4  ;;  %p1010_p13 = scmp.lt.s32.totalorder %s1004_s4, %s1004_s4 }
  0x1d   :  { %p1011_p0 = por %p1010_p13, %p1009_p12 }
  0x1f   :  { %p1012_p1 = pnand %p1011_p0, %p1005_p11 }
  0x21   :  { %1015 = shalt.err (!%p1012_p1)
}
  0x22   :  { %33 = dma.hbm_to_vmem [thread:$0]  %s1368_s1, 2048, %s28_s24, [#allocation6], %s1045_s19, %s1045_s19, %s1046_s20  }
  0x23   :  { %1038 = dma.done.wait [#allocation3], 256  }
  0x24   :  { %1039 = vsyncadd [#allocation3], 4294967040 }
  0x25   :  { %1040 = dma.done.wait [#allocation6], 2048  }
  0x26   :  { %1041 = vsyncadd [#allocation6], 4294965248  ;;  %v1096_v0 = vld [vmem:[#allocation5 + $0x8] sm:$0xff]  ;;  %v1098_v1 = vld [vmem:[#allocation5] sm:$0xff]  ;;  %s1048_s6 = smov 1   ;;  %s1049_s1 = smov 127  }
  0x27   :  { %74 = vrot.lane.b32.xlu1 %v1096_v0, %s1048_s6  ;;  %72 = vrot.lane.b32.xlu0 %v1098_v1, %s1048_s6  ;;  %v1104_v2 = vld [vmem:[#allocation5 + $0x48] sm:$0xff]  ;;  %v1106_v3 = vld [vmem:[#allocation5 + $0x40] sm:$0xff]  ;;  %v428_v4 = vld [vmem:[#allocation2] sm:$0xff]  ;;  %vm120_vm0 = vcmask 7168   ;;  %v202_v21 = vmul.f32 2.0, %v1098_v1  ;;  %vm185_vm1 = vcmask 121856  }
  0x28   :  { %v429_v5 = vld [vmem:[#allocation2 + $0x8] sm:$0xff]  ;;  %v1120_v7 = vld [vmem:[#allocation5 + $0x50] sm:$0xff]  ;;  %v1144_v11 = vld [vmem:[#allocation5 + $0x60] sm:$0xff]  ;;  %v210_v23 = vmul.f32 2.0, %v1106_v3  ;;  %v203_v27 = vmul.f32 2.0, %v1096_v0  ;;  %v211_v29 = vmul.f32 2.0, %v1104_v2 }
  0x29   :  { %v959_v6 = vpack.c.bf16 %v429_v5, %v428_v4  ;;  %v1122_v8 = vld [vmem:[#allocation5 + $0x10] sm:$0xff]  ;;  %v1128_v9 = vld [vmem:[#allocation5 + $0x58] sm:$0xff]  ;;  %v1146_v12 = vld [vmem:[#allocation5 + $0x20] sm:$0xff]  ;;  %vm266_vm2 = vcmask 1040384   ;;  %v212_v51 = vmul.f32 2.0, %v1120_v7  ;;  %vm315_vm3 = vcmask 1046528  }
  0x2a   :  { %v1130_v10 = vld [vmem:[#allocation5 + $0x18] sm:$0xff]  ;;  %v1152_v13 = vld [vmem:[#allocation5 + $0x68] sm:$0xff]  ;;  %v1168_v15 = vld [vmem:[#allocation5 + $0x70] sm:$0xff]  ;;  %v204_v4 = vmul.f32 2.0, %v1122_v8  ;;  %vm430_vm4 = vcmask 130048   ;;  %s1050_s7 = smov [#allocation7]  }
  0x2b   :  { %90 = vrot.lane.b32.xlu1 %v1104_v2, %s1048_s6  ;;  %88 = vrot.lane.b32.xlu0 %v1106_v3, %s1048_s6  ;;  %v1154_v14 = vld [vmem:[#allocation5 + $0x28] sm:$0xff]  ;;  %v1170_v16 = vld [vmem:[#allocation5 + $0x30] sm:$0xff]  ;;  %v1176_v17 = vld [vmem:[#allocation5 + $0x78] sm:$0xff]  ;;  %s884_s8 = sshll.u32 %s1050_s7, 4  ;;  %s885_s8 = int_to_ptr.vmem [resolvable:$true] %s884_s8 }
  0x2c   :  { %960 = vmatprep.subr.bf16.mxu0 %v959_v6  ;;  %963 = vmatprep.subr.bf16.mxu1 %v959_v6  ;;  %v1178_v18 = vld [vmem:[#allocation5 + $0x38] sm:$0xff]  ;;  %s1016_s9 = scalar_lea.vmem %s885_s8, 4096  ;;  %p1021_p3 = scmp.lt.s32.totalorder %s885_s8, %s885_s8 }
  0x2d   :  { %962 = vmatpush3.bf16.msra.mxu0 %v959_v6  ;;  %964 = vmatpush3.bf16.msra.mxu1 %v959_v6  ;;  %p1017_p2 = scmp.ne.s32.totalorder %s885_s8, %s1016_s9  ;;  %p1022_p4 = scmp.lt.s32.totalorder %s1016_s9, %s1016_s9 }
  0x2f   :  { %153 = vrot.lane.b32.xlu1 %v1106_v3, %s1049_s1  ;;  %137 = vrot.lane.b32.xlu0 %v1098_v1, %s1049_s1  ;;  %p1023_p5 = por %p1022_p4, %p1021_p3 }
  0x31   :  { %p1024_p6 = pnand %p1023_p5, %p1017_p2 }
  0x33   :  { %155 = vrot.lane.b32.xlu1 %v1104_v2, %s1049_s1  ;;  %139 = vrot.lane.b32.xlu0 %v1096_v0, %s1049_s1 }
  0x37   :  { %92 = vrot.lane.b32.xlu1 %v1120_v7, %s1048_s6  ;;  %76 = vrot.lane.b32.xlu0 %v1122_v8, %s1048_s6 }
  0x3b   :  { %94 = vrot.lane.b32.xlu1 %v1128_v9, %s1048_s6  ;;  %78 = vrot.lane.b32.xlu0 %v1130_v10, %s1048_s6 }
  0x3f   :  { %157 = vrot.lane.b32.xlu1 %v1120_v7, %s1049_s1  ;;  %141 = vrot.lane.b32.xlu0 %v1122_v8, %s1049_s1 }
  0x43   :  { %159 = vrot.lane.b32.xlu1 %v1128_v9, %s1049_s1  ;;  %143 = vrot.lane.b32.xlu0 %v1130_v10, %s1049_s1 }
  0x47   :  { %96 = vrot.lane.b32.xlu1 %v1144_v11, %s1048_s6  ;;  %80 = vrot.lane.b32.xlu0 %v1146_v12, %s1048_s6 }
  0x4b   :  { %98 = vrot.lane.b32.xlu1 %v1152_v13, %s1048_s6  ;;  %82 = vrot.lane.b32.xlu0 %v1154_v14, %s1048_s6 }
  0x4f   :  { %161 = vrot.lane.b32.xlu1 %v1144_v11, %s1049_s1  ;;  %145 = vrot.lane.b32.xlu0 %v1146_v12, %s1049_s1 }
  0x53   :  { %163 = vrot.lane.b32.xlu1 %v1152_v13, %s1049_s1  ;;  %147 = vrot.lane.b32.xlu0 %v1154_v14, %s1049_s1 }
  0x57   :  { %100 = vrot.lane.b32.xlu1 %v1168_v15, %s1048_s6  ;;  %84 = vrot.lane.b32.xlu0 %v1170_v16, %s1048_s6 }
  0x5b   :  { %102 = vrot.lane.b32.xlu1 %v1176_v17, %s1048_s6  ;;  %86 = vrot.lane.b32.xlu0 %v1178_v18, %s1048_s6 }
  0x5f   :  { %165 = vrot.lane.b32.xlu1 %v1168_v15, %s1049_s1  ;;  %149 = vrot.lane.b32.xlu0 %v1170_v16, %s1049_s1 }
  0x63   :  { %167 = vrot.lane.b32.xlu1 %v1176_v17, %s1049_s1  ;;  %151 = vrot.lane.b32.xlu0 %v1178_v18, %s1049_s1 }
  0x99   :  { %v75_v19 = vpop.permute.xlu1 %74  ;;  %v73_v20 = vpop.permute.xlu0 %72 }
  0x9a   :  { %v121_v25 = vsel %vm120_vm0, %v1098_v1, %v73_v20  ;;  %v122_v33 = vsel %vm120_vm0, %v1096_v0, %v75_v19 }
  0x9b   :  { %v218_v28 = vadd.f32 %v202_v21, %v121_v25  ;;  %v219_v39 = vadd.f32 %v203_v27, %v122_v33 }
  0x9d   :  { %v91_v22 = vpop.permute.xlu1 %90  ;;  %v89_v24 = vpop.permute.xlu0 %88 }
  0x9e   :  { %v129_v26 = vsel %vm120_vm0, %v1106_v3, %v89_v24  ;;  %v130_v34 = vsel %vm120_vm0, %v1104_v2, %v91_v22 }
  0x9f   :  { %v226_v30 = vadd.f32 %v210_v23, %v129_v26  ;;  %v227_v40 = vadd.f32 %v211_v29, %v130_v34 }
  0xa1   :  { %v154_v31 = vpop.permute.xlu1 %153  ;;  %v138_v32 = vpop.permute.xlu0 %137 }
  0xa2   :  { %v194_v35 = vsel %vm185_vm1, %v154_v31, %v1106_v3  ;;  %v186_v36 = vsel %vm185_vm1, %v138_v32, %v1098_v1  ;;  %v213_v32 = vmul.f32 2.0, %v1128_v9 }
  0xa3   :  { %v242_v37 = vadd.f32 %v226_v30, %v194_v35  ;;  %v234_v38 = vadd.f32 %v218_v28, %v186_v36 }
  0xa5   :  { %v156_v41 = vpop.permute.xlu1 %155  ;;  %v140_v42 = vpop.permute.xlu0 %139  ;;  %v267_v43 = vrot.slane %v234_v38, 7  ;;  %v279_v44 = vrot.slane %v242_v37, 7  ;;  %v364_v49 = vmul.f32 2.0, %v234_v38  ;;  %v372_v50 = vmul.f32 2.0, %v242_v37 }
  0xa6   :  { %v195_v45 = vsel %vm185_vm1, %v156_v41, %v1104_v2  ;;  %v187_v46 = vsel %vm185_vm1, %v140_v42, %v1096_v0  ;;  %v316_v60 = vrot.slane %v234_v38, 1  ;;  %v328_v62 = vrot.slane %v242_v37, 1 }
  0xa7   :  { %v243_v47 = vadd.f32 %v227_v40, %v195_v45  ;;  %v235_v48 = vadd.f32 %v219_v39, %v187_v46  ;;  %v307_v52 = vsel %vm266_vm2, %v234_v38, %v267_v43  ;;  %v311_v53 = vsel %vm266_vm2, %v242_v37, %v279_v44 }
  0xa8   :  { %v380_v0 = vadd.f32 %v364_v49, %v307_v52  ;;  %v388_v1 = vadd.f32 %v372_v50, %v311_v53  ;;  %v205_v38 = vmul.f32 2.0, %v1130_v10 }
  0xa9   :  { %v280_v54 = vrot.slane %v243_v47, 7  ;;  %v373_v55 = vmul.f32 2.0, %v243_v47  ;;  %v268_v56 = vrot.slane %v235_v48, 7  ;;  %v365_v57 = vmul.f32 2.0, %v235_v48  ;;  %v93_v58 = vpop.permute.xlu1 %92  ;;  %v77_v59 = vpop.permute.xlu0 %76 }
  0xaa   :  { %v317_v61 = vrot.slane %v235_v48, 1  ;;  %v329_v63 = vrot.slane %v243_v47, 1  ;;  %v131_v26 = vsel %vm120_vm0, %v1120_v7, %v93_v58  ;;  %v123_v27 = vsel %vm120_vm0, %v1122_v8, %v77_v59 }
  0xab   :  { %v269_v2 = vsel %vm266_vm2, %v267_v43, %v268_v56  ;;  %v281_v3 = vsel %vm266_vm2, %v279_v44, %v280_v54  ;;  %v228_v35 = vadd.f32 %v212_v51, %v131_v26  ;;  %v220_v36 = vadd.f32 %v204_v4, %v123_v27 }
  0xac   :  { %v318_v5 = vsel %vm315_vm3, %v316_v60, %v317_v61  ;;  %v330_v6 = vsel %vm315_vm3, %v328_v62, %v329_v63  ;;  %v381_v19 = vadd.f32 %v365_v57, %v269_v2  ;;  %v356_v24 = vsel %vm315_vm3, %v317_v61, %v235_v48 }
  0xad   :  { %v95_v20 = vpop.permute.xlu1 %94  ;;  %v79_v21 = vpop.permute.xlu0 %78  ;;  %v396_v22 = vadd.f32 %v380_v0, %v318_v5  ;;  %v404_v23 = vadd.f32 %v388_v1, %v330_v6  ;;  %v389_v25 = vadd.f32 %v373_v55, %v281_v3  ;;  %v360_v31 = vsel %vm315_vm3, %v329_v63, %v243_v47 }
  0xae   :  { %v397_v28 = vadd.f32 %v381_v19, %v356_v24  ;;  %v132_v37 = vsel %vm120_vm0, %v1128_v9, %v95_v20  ;;  %v124_v41 = vsel %vm120_vm0, %v1130_v10, %v79_v21  ;;  %v214_v19 = vmul.f32 2.0, %v1144_v11 }
  0xaf   :  { %v412_v29 = vmul.f32 0.0625, %v396_v22  ;;  %v420_v30 = vmul.f32 0.0625, %v404_v23  ;;  %v405_v34 = vadd.f32 %v389_v25, %v360_v31  ;;  %v229_v47 = vadd.f32 %v213_v32, %v132_v37 }
  0xb0   :  { %v413_v33 = vmul.f32 0.0625, %v397_v28  ;;  %v221_v48 = vadd.f32 %v205_v38, %v124_v41  ;;  %v206_v23 = vmul.f32 2.0, %v1146_v12 }
  0xb1   :  { %935 = vmatprep.mubr.msk.f32.mxu0 %vm430_vm4, %v412_v29  ;;  %947 = vmatprep.mubr.msk.f32.mxu1 %vm430_vm4, %v420_v30  ;;  %v158_v39 = vpop.permute.xlu1 %157  ;;  %v142_v40 = vpop.permute.xlu0 %141  ;;  %v421_v44 = vmul.f32 0.0625, %v405_v34 }
  0xb2   :  { %v196_v42 = vsel %vm185_vm1, %v158_v39, %v1120_v7  ;;  %v188_v43 = vsel %vm185_vm1, %v142_v40, %v1122_v8  ;;  %936 = vmatmul.mubr.msk.f32.vlgmr.msra.gmra.mrb[0].mxu0 %vm430_vm4, %v413_v33  ;;  %v207_v40 = vmul.f32 2.0, %v1154_v14 }
  0xb3   :  { %v244_v45 = vadd.f32 %v228_v35, %v196_v42  ;;  %v236_v46 = vadd.f32 %v220_v36, %v188_v43  ;;  %948 = vmatmul.mubr.msk.f32.vlgmr.msra.gmra.mrb[0].mxu1 %vm430_vm4, %v421_v44  ;;  %v215_v35 = vmul.f32 2.0, %v1152_v13 }
  0xb5   :  { %v282_v49 = vrot.slane %v244_v45, 7  ;;  %v270_v50 = vrot.slane %v236_v46, 7  ;;  %v160_v51 = vpop.permute.xlu1 %159  ;;  %v144_v52 = vpop.permute.xlu0 %143  ;;  %v374_v53 = vmul.f32 2.0, %v244_v45  ;;  %v366_v55 = vmul.f32 2.0, %v236_v46 }
  0xb6   :  { %v197_v7 = vsel %vm185_vm1, %v160_v51, %v1128_v9  ;;  %v189_v8 = vsel %vm185_vm1, %v144_v52, %v1130_v10  ;;  %v331_v59 = vrot.slane %v244_v45, 1  ;;  %v319_v1 = vrot.slane %v236_v46, 1 }
  0xb7   :  { %v312_v54 = vsel %vm266_vm2, %v244_v45, %v282_v49  ;;  %v245_v56 = vadd.f32 %v229_v47, %v197_v7  ;;  %v237_v57 = vadd.f32 %v221_v48, %v189_v8  ;;  %v308_v58 = vsel %vm266_vm2, %v236_v46, %v270_v50 }
  0xb8   :  { %v390_v9 = vadd.f32 %v374_v53, %v312_v54  ;;  %v382_v5 = vadd.f32 %v366_v55, %v308_v58 }
  0xb9   :  { %v283_v60 = vrot.slane %v245_v56, 7  ;;  %v332_v61 = vrot.slane %v245_v56, 1  ;;  %v271_v62 = vrot.slane %v237_v57, 7  ;;  %v97_v63 = vpop.permute.xlu1 %96  ;;  %v81_v0 = vpop.permute.xlu0 %80  ;;  %v320_v2 = vrot.slane %v237_v57, 1 }
  0xba   :  { %v367_v3 = vmul.f32 2.0, %v237_v57  ;;  %v375_v4 = vmul.f32 2.0, %v245_v56  ;;  %v133_v29 = vsel %vm120_vm0, %v1144_v11, %v97_v63  ;;  %v125_v30 = vsel %vm120_vm0, %v1146_v12, %v81_v0 }
  0xbb   :  { %v333_v10 = vsel %vm315_vm3, %v331_v59, %v332_v61  ;;  %v272_v6 = vsel %vm266_vm2, %v270_v50, %v271_v62  ;;  %v321_v20 = vsel %vm315_vm3, %v319_v1, %v320_v2  ;;  %v357_v27 = vsel %vm315_vm3, %v320_v2, %v237_v57 }
  0xbc   :  { %v406_v21 = vadd.f32 %v390_v9, %v333_v10  ;;  %v383_v22 = vadd.f32 %v367_v3, %v272_v6  ;;  %v398_v26 = vadd.f32 %v382_v5, %v321_v20  ;;  %v284_v28 = vsel %vm266_vm2, %v282_v49, %v283_v60 }
  0xbd   :  { %v99_v24 = vpop.permute.xlu1 %98  ;;  %v83_v25 = vpop.permute.xlu0 %82  ;;  %v391_v34 = vadd.f32 %v375_v4, %v284_v28  ;;  %v361_v37 = vsel %vm315_vm3, %v332_v61, %v245_v56  ;;  %v230_v38 = vadd.f32 %v214_v19, %v133_v29  ;;  %v222_v39 = vadd.f32 %v206_v23, %v125_v30 }
  0xbe   :  { %v422_v31 = vmul.f32 0.0625, %v406_v21  ;;  %v399_v32 = vadd.f32 %v383_v22, %v357_v27  ;;  %v414_v33 = vmul.f32 0.0625, %v398_v26  ;;  %v134_v44 = vsel %vm120_vm0, %v1152_v13, %v99_v24 }
  0xbf   :  { %v407_v43 = vadd.f32 %v391_v34, %v361_v37  ;;  %v126_v45 = vsel %vm120_vm0, %v1154_v14, %v83_v25  ;;  %v231_v51 = vadd.f32 %v215_v35, %v134_v44  ;;  %v216_v19 = vmul.f32 2.0, %v1168_v15 }
  0xc0   :  { %950 = vmatprep.mubr.msk.f32.mxu1 %vm430_vm4, %v422_v31  ;;  %v415_v36 = vmul.f32 0.0625, %v399_v32  ;;  %938 = vmatprep.mubr.msk.f32.mxu0 %vm430_vm4, %v414_v33  ;;  %v223_v52 = vadd.f32 %v207_v40, %v126_v45  ;;  %v208_v23 = vmul.f32 2.0, %v1170_v16  ;;  %v217_v35 = vmul.f32 2.0, %v1176_v17 }
  0xc1   :  { %v162_v41 = vpop.permute.xlu1 %161  ;;  %v146_v42 = vpop.permute.xlu0 %145  ;;  %v423_v50 = vmul.f32 0.0625, %v407_v43  ;;  %v209_v40 = vmul.f32 2.0, %v1178_v18 }
  0xc2   :  { %v198_v46 = vsel %vm185_vm1, %v162_v41, %v1144_v11  ;;  %v190_v47 = vsel %vm185_vm1, %v146_v42, %v1146_v12  ;;  %939 = vmatmul.mubr.msk.f32.gmra.mrb[2].mxu0 %vm430_vm4, %v415_v36 }
  0xc3   :  { %v246_v48 = vadd.f32 %v230_v38, %v198_v46  ;;  %v238_v49 = vadd.f32 %v222_v39, %v190_v47  ;;  %951 = vmatmul.mubr.msk.f32.gmra.mrb[2].mxu1 %vm430_vm4, %v423_v50 }
  0xc5   :  { %v285_v53 = vrot.slane %v246_v48, 7  ;;  %v273_v7 = vrot.slane %v238_v49, 7  ;;  %v164_v8 = vpop.permute.xlu1 %163  ;;  %v148_v54 = vpop.permute.xlu0 %147  ;;  %v376_v55 = vmul.f32 2.0, %v246_v48  ;;  %v368_v57 = vmul.f32 2.0, %v238_v49 }
  0xc6   :  { %v199_v11 = vsel %vm185_vm1, %v164_v8, %v1152_v13  ;;  %v191_v12 = vsel %vm185_vm1, %v148_v54, %v1154_v14  ;;  %v334_v61 = vrot.slane %v246_v48, 1  ;;  %v322_v3 = vrot.slane %v238_v49, 1 }
  0xc7   :  { %v313_v56 = vsel %vm266_vm2, %v246_v48, %v285_v53  ;;  %v247_v58 = vadd.f32 %v231_v51, %v199_v11  ;;  %v239_v59 = vadd.f32 %v223_v52, %v191_v12  ;;  %v309_v60 = vsel %vm266_vm2, %v238_v49, %v273_v7 }
  0xc8   :  { %v392_v13 = vadd.f32 %v376_v55, %v313_v56  ;;  %v384_v10 = vadd.f32 %v368_v57, %v309_v60 }
  0xc9   :  { %v286_v62 = vrot.slane %v247_v58, 7  ;;  %v335_v63 = vrot.slane %v247_v58, 1  ;;  %v274_v0 = vrot.slane %v239_v59, 7  ;;  %v101_v1 = vpop.permute.xlu1 %100  ;;  %v85_v2 = vpop.permute.xlu0 %84  ;;  %v323_v9 = vrot.slane %v239_v59, 1 }
  0xca   :  { %v369_v4 = vmul.f32 2.0, %v239_v59  ;;  %v377_v5 = vmul.f32 2.0, %v247_v58  ;;  %v135_v29 = vsel %vm120_vm0, %v1168_v15, %v101_v1  ;;  %v127_v30 = vsel %vm120_vm0, %v1170_v16, %v85_v2 }
  0xcb   :  { %v336_v14 = vsel %vm315_vm3, %v334_v61, %v335_v63  ;;  %v275_v6 = vsel %vm266_vm2, %v273_v7, %v274_v0  ;;  %v324_v20 = vsel %vm315_vm3, %v322_v3, %v323_v9  ;;  %v358_v27 = vsel %vm315_vm3, %v323_v9, %v239_v59 }
  0xcc   :  { %v408_v21 = vadd.f32 %v392_v13, %v336_v14  ;;  %v385_v22 = vadd.f32 %v369_v4, %v275_v6  ;;  %v400_v26 = vadd.f32 %v384_v10, %v324_v20  ;;  %v287_v28 = vsel %vm266_vm2, %v285_v53, %v286_v62 }
  0xcd   :  { %v103_v24 = vpop.permute.xlu1 %102  ;;  %v87_v25 = vpop.permute.xlu0 %86  ;;  %v393_v34 = vadd.f32 %v377_v5, %v287_v28  ;;  %v362_v37 = vsel %vm315_vm3, %v335_v63, %v247_v58  ;;  %v232_v38 = vadd.f32 %v216_v19, %v135_v29  ;;  %v224_v39 = vadd.f32 %v208_v23, %v127_v30 }
  0xce   :  { %v424_v31 = vmul.f32 0.0625, %v408_v21  ;;  %v401_v32 = vadd.f32 %v385_v22, %v358_v27  ;;  %v416_v33 = vmul.f32 0.0625, %v400_v26  ;;  %v136_v44 = vsel %vm120_vm0, %v1176_v17, %v103_v24 }
  0xcf   :  { %v409_v43 = vadd.f32 %v393_v34, %v362_v37  ;;  %v128_v45 = vsel %vm120_vm0, %v1178_v18, %v87_v25  ;;  %v233_v51 = vadd.f32 %v217_v35, %v136_v44 }
  0xd0   :  { %953 = vmatprep.mubr.msk.f32.mxu1 %vm430_vm4, %v424_v31  ;;  %v417_v36 = vmul.f32 0.0625, %v401_v32  ;;  %941 = vmatprep.mubr.msk.f32.mxu0 %vm430_vm4, %v416_v33  ;;  %v225_v52 = vadd.f32 %v209_v40, %v128_v45 }
  0xd1   :  { %v166_v41 = vpop.permute.xlu1 %165  ;;  %v150_v42 = vpop.permute.xlu0 %149  ;;  %v425_v50 = vmul.f32 0.0625, %v409_v43 }
  0xd2   :  { %v200_v46 = vsel %vm185_vm1, %v166_v41, %v1168_v15  ;;  %v192_v47 = vsel %vm185_vm1, %v150_v42, %v1170_v16  ;;  %942 = vmatmul.mubr.msk.f32.gmra.mrb[4].mxu0 %vm430_vm4, %v417_v36 }
  0xd3   :  { %v248_v48 = vadd.f32 %v232_v38, %v200_v46  ;;  %v240_v49 = vadd.f32 %v224_v39, %v192_v47  ;;  %954 = vmatmul.mubr.msk.f32.gmra.mrb[4].mxu1 %vm430_vm4, %v425_v50 }
  0xd5   :  { %v288_v53 = vrot.slane %v248_v48, 7  ;;  %v276_v7 = vrot.slane %v240_v49, 7  ;;  %v168_v8 = vpop.permute.xlu1 %167  ;;  %v152_v54 = vpop.permute.xlu0 %151  ;;  %v378_v55 = vmul.f32 2.0, %v248_v48  ;;  %v370_v12 = vmul.f32 2.0, %v240_v49 }
  0xd6   :  { %v201_v15 = vsel %vm185_vm1, %v168_v8, %v1176_v17  ;;  %v193_v16 = vsel %vm185_vm1, %v152_v54, %v1178_v18  ;;  %v337_v58 = vrot.slane %v248_v48, 1  ;;  %v325_v0 = vrot.slane %v240_v49, 1 }
  0xd7   :  { %v314_v11 = vsel %vm266_vm2, %v248_v48, %v288_v53  ;;  %v249_v56 = vadd.f32 %v233_v51, %v201_v15  ;;  %v241_v57 = vadd.f32 %v225_v52, %v193_v16  ;;  %v310_v59 = vsel %vm266_vm2, %v240_v49, %v276_v7 }
  0xd8   :  { %v394_v3 = vadd.f32 %v378_v55, %v314_v11  ;;  %v386_v17 = vadd.f32 %v370_v12, %v310_v59 }
  0xd9   :  { %v289_v60 = vrot.slane %v249_v56, 7  ;;  %v338_v61 = vrot.slane %v249_v56, 1  ;;  %v379_v62 = vmul.f32 2.0, %v249_v56  ;;  %v277_v63 = vrot.slane %v241_v57, 7 }
  0xda   :  { %v326_v1 = vrot.slane %v241_v57, 1  ;;  %v371_v2 = vmul.f32 2.0, %v241_v57 }
  0xdb   :  { %v339_v9 = vsel %vm315_vm3, %v337_v58, %v338_v61  ;;  %v278_v18 = vsel %vm266_vm2, %v276_v7, %v277_v63  ;;  %v290_v4 = vsel %vm266_vm2, %v288_v53, %v289_v60  ;;  %v363_v22 = vsel %vm315_vm3, %v338_v61, %v249_v56 }
  0xdc   :  { %v327_v13 = vsel %vm315_vm3, %v325_v0, %v326_v1  ;;  %v410_v5 = vadd.f32 %v394_v3, %v339_v9  ;;  %v387_v10 = vadd.f32 %v371_v2, %v278_v18  ;;  %v359_v6 = vsel %vm315_vm3, %v326_v1, %v241_v57 }
  0xdd   :  { %v402_v14 = vadd.f32 %v386_v17, %v327_v13  ;;  %v395_v19 = vadd.f32 %v379_v62, %v290_v4 }
  0xde   :  { %v426_v20 = vmul.f32 0.0625, %v410_v5  ;;  %v403_v21 = vadd.f32 %v387_v10, %v359_v6 }
  0xdf   :  { %v418_v23 = vmul.f32 0.0625, %v402_v14  ;;  %v411_v24 = vadd.f32 %v395_v19, %v363_v22 }
  0xe0   :  { %956 = vmatprep.mubr.msk.f32.mxu1 %vm430_vm4, %v426_v20  ;;  %v419_v25 = vmul.f32 0.0625, %v403_v21 }
  0xe1   :  { %944 = vmatprep.mubr.msk.f32.mxu0 %vm430_vm4, %v418_v23  ;;  %v427_v26 = vmul.f32 0.0625, %v411_v24 }
  0xe2   :  { %945 = vmatmul.mubr.msk.f32.gmra.mrb[6].mxu0 %vm430_vm4, %v419_v25 }
  0xe3   :  { %957 = vmatmul.mubr.msk.f32.gmra.mrb[6].mxu1 %vm430_vm4, %v427_v26 }
 0x185   :  { %v937_v27 = vpop.f32.mrb[0].mxu0 }
 0x186   :  { %v641_v28 = vrot.slane %v937_v27, 7  ;;  %v689_v29 = vrot.slane %v937_v27, 1  ;;  %v545_v30 = vpop.f32.mrb[1].mxu0  ;;  %v753_v31 = vmul.f32 0.75, %v937_v27  ;;  %v949_v32 = vpop.f32.mrb[0].mxu1 }
 0x187   :  { %v640_v33 = vrot.slane %v545_v30, 7  ;;  %v688_v34 = vrot.slane %v545_v30, 1  ;;  %v752_v35 = vmul.f32 0.75, %v545_v30  ;;  %v653_v37 = vrot.slane %v949_v32, 7  ;;  %v585_v40 = vpop.f32.mrb[1].mxu1 }
 0x188   :  { %v728_v36 = vsel %vm315_vm3, %v689_v29, %v937_v27  ;;  %v701_v38 = vrot.slane %v949_v32, 1  ;;  %v761_v39 = vmul.f32 0.75, %v949_v32  ;;  %v652_v51 = vrot.slane %v585_v40, 7 }
 0x189   :  { %v785_v41 = vmul.f32 0.25, %v728_v36  ;;  %v642_v42 = vsel %vm266_vm2, %v640_v33, %v641_v28  ;;  %v680_v43 = vsel %vm266_vm2, %v545_v30, %v640_v33  ;;  %v690_v44 = vsel %vm315_vm3, %v688_v34, %v689_v29 }
 0x18a   :  { %v732_v45 = vsel %vm315_vm3, %v701_v38, %v949_v32  ;;  %v736_v46 = vmul.f32 0.25, %v680_v43  ;;  %v737_v47 = vmul.f32 0.25, %v642_v42  ;;  %v784_v48 = vmul.f32 0.25, %v690_v44 }
 0x18b   :  { %v801_v49 = vadd.f32 %v785_v41, %v753_v31  ;;  %v793_v50 = vmul.f32 0.25, %v732_v45  ;;  %v700_v52 = vrot.slane %v585_v40, 1  ;;  %v654_v55 = vsel %vm266_vm2, %v652_v51, %v653_v37 }
 0x18c   :  { %v768_v53 = vadd.f32 %v752_v35, %v736_v46  ;;  %v769_v7 = vadd.f32 %v753_v31, %v737_v47  ;;  %v800_v8 = vadd.f32 %v784_v48, %v752_v35  ;;  %v684_v15 = vsel %vm266_vm2, %v585_v40, %v652_v51 }
 0x18d   :  { %850 = vst [vmem:[#allocation7 + $0x11] ss:$2 sm:$0xff] %v801_v49  ;;  %v809_v54 = vadd.f32 %v793_v50, %v761_v39  ;;  %v702_v16 = vsel %vm315_vm3, %v700_v52, %v701_v38  ;;  %v744_v11 = vmul.f32 0.25, %v684_v15  ;;  %v745_v12 = vmul.f32 0.25, %v654_v55 }
 0x18e   :  { %816 = vst [vmem:[#allocation7] ss:$2 sm:$0xff] %v768_v53  ;;  %818 = vst [vmem:[#allocation7 + $0x10] ss:$2 sm:$0xff] %v769_v7  ;;  %v760_v56 = vmul.f32 0.75, %v585_v40  ;;  %v792_v57 = vmul.f32 0.25, %v702_v16 }
 0x18f   :  { %848 = vst [vmem:[#allocation7 + $0x1] ss:$2 sm:$0xff] %v800_v8  ;;  %866 = vst [vmem:[#allocation7 + $0x91] ss:$2 sm:$0xff] %v809_v54  ;;  %v777_v59 = vadd.f32 %v761_v39, %v745_v12 }
 0x190   :  { %v776_v58 = vadd.f32 %v760_v56, %v744_v11  ;;  %v808_v60 = vadd.f32 %v792_v57, %v760_v56 }
 0x191   :  { %834 = vst [vmem:[#allocation7 + $0x90] ss:$2 sm:$0xff] %v777_v59 }
 0x192   :  { %832 = vst [vmem:[#allocation7 + $0x80] ss:$2 sm:$0xff] %v776_v58  ;;  %864 = vst [vmem:[#allocation7 + $0x81] ss:$2 sm:$0xff] %v808_v60 }
 0x195   :  { %v940_v61 = vpop.f32.mrb[2].mxu0 }
 0x196   :  { %v644_v62 = vrot.slane %v940_v61, 7  ;;  %v692_v63 = vrot.slane %v940_v61, 1  ;;  %v555_v0 = vpop.f32.mrb[3].mxu0  ;;  %v755_v17 = vmul.f32 0.75, %v940_v61  ;;  %v952_v9 = vpop.f32.mrb[2].mxu1 }
 0x197   :  { %v643_v1 = vrot.slane %v555_v0, 7  ;;  %v691_v2 = vrot.slane %v555_v0, 1  ;;  %v754_v18 = vmul.f32 0.75, %v555_v0  ;;  %v656_v13 = vrot.slane %v952_v9, 7  ;;  %v595_v14 = vpop.f32.mrb[3].mxu1 }
 0x198   :  { %v729_v3 = vsel %vm315_vm3, %v692_v63, %v940_v61  ;;  %v704_v5 = vrot.slane %v952_v9, 1  ;;  %v763_v10 = vmul.f32 0.75, %v952_v9  ;;  %v655_v21 = vrot.slane %v595_v14, 7 }
 0x199   :  { %v787_v4 = vmul.f32 0.25, %v729_v3  ;;  %v645_v6 = vsel %vm266_vm2, %v643_v1, %v644_v62  ;;  %v681_v19 = vsel %vm266_vm2, %v555_v0, %v643_v1  ;;  %v693_v20 = vsel %vm315_vm3, %v691_v2, %v692_v63 }
 0x19a   :  { %v733_v23 = vsel %vm315_vm3, %v704_v5, %v952_v9  ;;  %v738_v24 = vmul.f32 0.25, %v681_v19  ;;  %v739_v25 = vmul.f32 0.25, %v645_v6  ;;  %v786_v27 = vmul.f32 0.25, %v693_v20 }
 0x19b   :  { %v803_v22 = vadd.f32 %v787_v4, %v755_v17  ;;  %v795_v26 = vmul.f32 0.25, %v733_v23  ;;  %v657_v28 = vsel %vm266_vm2, %v655_v21, %v656_v13  ;;  %v685_v29 = vsel %vm266_vm2, %v595_v14, %v655_v21 }
 0x19c   :  { %v770_v30 = vadd.f32 %v754_v18, %v738_v24  ;;  %v771_v31 = vadd.f32 %v755_v17, %v739_v25  ;;  %v703_v32 = vrot.slane %v595_v14, 1  ;;  %v746_v33 = vmul.f32 0.25, %v685_v29 }
 0x19d   :  { %854 = vst [vmem:[#allocation7 + $0x31] ss:$2 sm:$0xff] %v803_v22  ;;  %v811_v34 = vadd.f32 %v795_v26, %v763_v10  ;;  %v802_v35 = vadd.f32 %v786_v27, %v754_v18  ;;  %v747_v36 = vmul.f32 0.25, %v657_v28  ;;  %v762_v37 = vmul.f32 0.75, %v595_v14 }
 0x19e   :  { %820 = vst [vmem:[#allocation7 + $0x20] ss:$2 sm:$0xff] %v770_v30  ;;  %822 = vst [vmem:[#allocation7 + $0x30] ss:$2 sm:$0xff] %v771_v31  ;;  %v705_v38 = vsel %vm315_vm3, %v703_v32, %v704_v5 }
 0x19f   :  { %870 = vst [vmem:[#allocation7 + $0xb1] ss:$2 sm:$0xff] %v811_v34  ;;  %852 = vst [vmem:[#allocation7 + $0x21] ss:$2 sm:$0xff] %v802_v35  ;;  %v778_v39 = vadd.f32 %v762_v37, %v746_v33  ;;  %v779_v40 = vadd.f32 %v763_v10, %v747_v36  ;;  %v794_v41 = vmul.f32 0.25, %v705_v38 }
 0x1a1   :  { %v810_v42 = vadd.f32 %v794_v41, %v762_v37  ;;  %836 = vst [vmem:[#allocation7 + $0xa0] ss:$2 sm:$0xff] %v778_v39  ;;  %838 = vst [vmem:[#allocation7 + $0xb0] ss:$2 sm:$0xff] %v779_v40 }
 0x1a3   :  { %868 = vst [vmem:[#allocation7 + $0xa1] ss:$2 sm:$0xff] %v810_v42 }
 0x1a5   :  { %v943_v43 = vpop.f32.mrb[4].mxu0 }
 0x1a6   :  { %v647_v44 = vrot.slane %v943_v43, 7  ;;  %v695_v45 = vrot.slane %v943_v43, 1  ;;  %v565_v46 = vpop.f32.mrb[5].mxu0  ;;  %v757_v50 = vmul.f32 0.75, %v943_v43  ;;  %v955_v51 = vpop.f32.mrb[4].mxu1 }
 0x1a7   :  { %v646_v47 = vrot.slane %v565_v46, 7  ;;  %v694_v48 = vrot.slane %v565_v46, 1  ;;  %v756_v52 = vmul.f32 0.75, %v565_v46  ;;  %v659_v7 = vrot.slane %v955_v51, 7  ;;  %v605_v55 = vpop.f32.mrb[5].mxu1 }
 0x1a8   :  { %v730_v49 = vsel %vm315_vm3, %v695_v45, %v943_v43  ;;  %v707_v8 = vrot.slane %v955_v51, 1  ;;  %v765_v54 = vmul.f32 0.75, %v955_v51  ;;  %v658_v12 = vrot.slane %v605_v55, 7 }
 0x1a9   :  { %v789_v53 = vmul.f32 0.25, %v730_v49  ;;  %v648_v15 = vsel %vm266_vm2, %v646_v47, %v647_v44  ;;  %v682_v16 = vsel %vm266_vm2, %v565_v46, %v646_v47  ;;  %v696_v11 = vsel %vm315_vm3, %v694_v48, %v695_v45 }
 0x1aa   :  { %v734_v57 = vsel %vm315_vm3, %v707_v8, %v955_v51  ;;  %v740_v58 = vmul.f32 0.25, %v682_v16  ;;  %v741_v59 = vmul.f32 0.25, %v648_v15  ;;  %v788_v61 = vmul.f32 0.25, %v696_v11 }
 0x1ab   :  { %v805_v56 = vadd.f32 %v789_v53, %v757_v50  ;;  %v797_v60 = vmul.f32 0.25, %v734_v57  ;;  %v660_v62 = vsel %vm266_vm2, %v658_v12, %v659_v7  ;;  %v686_v63 = vsel %vm266_vm2, %v605_v55, %v658_v12 }
 0x1ac   :  { %v772_v0 = vadd.f32 %v756_v52, %v740_v58  ;;  %v773_v1 = vadd.f32 %v757_v50, %v741_v59  ;;  %v706_v2 = vrot.slane %v605_v55, 1  ;;  %v748_v3 = vmul.f32 0.25, %v686_v63 }
 0x1ad   :  { %858 = vst [vmem:[#allocation7 + $0x51] ss:$2 sm:$0xff] %v805_v56  ;;  %v813_v17 = vadd.f32 %v797_v60, %v765_v54  ;;  %v804_v9 = vadd.f32 %v788_v61, %v756_v52  ;;  %v749_v18 = vmul.f32 0.25, %v660_v62  ;;  %v764_v4 = vmul.f32 0.75, %v605_v55 }
 0x1ae   :  { %824 = vst [vmem:[#allocation7 + $0x40] ss:$2 sm:$0xff] %v772_v0  ;;  %826 = vst [vmem:[#allocation7 + $0x50] ss:$2 sm:$0xff] %v773_v1  ;;  %v708_v13 = vsel %vm315_vm3, %v706_v2, %v707_v8 }
 0x1af   :  { %874 = vst [vmem:[#allocation7 + $0xd1] ss:$2 sm:$0xff] %v813_v17  ;;  %856 = vst [vmem:[#allocation7 + $0x41] ss:$2 sm:$0xff] %v804_v9  ;;  %v780_v5 = vadd.f32 %v764_v4, %v748_v3  ;;  %v781_v10 = vadd.f32 %v765_v54, %v749_v18  ;;  %v796_v14 = vmul.f32 0.25, %v708_v13 }
 0x1b1   :  { %v812_v6 = vadd.f32 %v796_v14, %v764_v4  ;;  %840 = vst [vmem:[#allocation7 + $0xc0] ss:$2 sm:$0xff] %v780_v5  ;;  %842 = vst [vmem:[#allocation7 + $0xd0] ss:$2 sm:$0xff] %v781_v10 }
 0x1b3   :  { %872 = vst [vmem:[#allocation7 + $0xc1] ss:$2 sm:$0xff] %v812_v6 }
 0x1b5   :  { %v946_v19 = vpop.f32.mrb[6].mxu0 }
 0x1b6   :  { %v650_v20 = vrot.slane %v946_v19, 7  ;;  %v698_v21 = vrot.slane %v946_v19, 1  ;;  %v759_v22 = vmul.f32 0.75, %v946_v19  ;;  %v958_v23 = vpop.f32.mrb[6].mxu1  ;;  %v575_v24 = vpop.f32.mrb[7].mxu0 }
 0x1b7   :  { %v662_v25 = vrot.slane %v958_v23, 7  ;;  %v710_v26 = vrot.slane %v958_v23, 1  ;;  %v767_v27 = vmul.f32 0.75, %v958_v23  ;;  %v649_v28 = vrot.slane %v575_v24, 7  ;;  %v615_v29 = vpop.f32.mrb[7].mxu1 }
 0x1b8   :  { %v731_v30 = vsel %vm315_vm3, %v698_v21, %v946_v19  ;;  %v697_v31 = vrot.slane %v575_v24, 1  ;;  %v758_v32 = vmul.f32 0.75, %v575_v24  ;;  %v661_v33 = vrot.slane %v615_v29, 7 }
 0x1b9   :  { %v791_v34 = vmul.f32 0.25, %v731_v30  ;;  %v735_v35 = vsel %vm315_vm3, %v710_v26, %v958_v23  ;;  %v651_v36 = vsel %vm266_vm2, %v649_v28, %v650_v20  ;;  %v683_v37 = vsel %vm266_vm2, %v575_v24, %v649_v28 }
 0x1ba   :  { %v799_v38 = vmul.f32 0.25, %v735_v35  ;;  %v699_v39 = vsel %vm315_vm3, %v697_v31, %v698_v21  ;;  %v742_v40 = vmul.f32 0.25, %v683_v37  ;;  %v743_v41 = vmul.f32 0.25, %v651_v36 }
 0x1bb   :  { %v807_v42 = vadd.f32 %v791_v34, %v759_v22  ;;  %v790_v43 = vmul.f32 0.25, %v699_v39  ;;  %v663_v44 = vsel %vm266_vm2, %v661_v33, %v662_v25  ;;  %v687_v45 = vsel %vm266_vm2, %v615_v29, %v661_v33 }
 0x1bc   :  { %v815_v46 = vadd.f32 %v799_v38, %v767_v27  ;;  %v774_v47 = vadd.f32 %v758_v32, %v742_v40  ;;  %v775_v48 = vadd.f32 %v759_v22, %v743_v41  ;;  %v709_v49 = vrot.slane %v615_v29, 1 }
 0x1bd   :  { %862 = vst [vmem:[#allocation7 + $0x71] ss:$2 sm:$0xff] %v807_v42  ;;  %v806_v50 = vadd.f32 %v790_v43, %v758_v32  ;;  %v750_v51 = vmul.f32 0.25, %v687_v45  ;;  %v751_v52 = vmul.f32 0.25, %v663_v44  ;;  %v766_v53 = vmul.f32 0.75, %v615_v29 }
 0x1be   :  { %878 = vst [vmem:[#allocation7 + $0xf1] ss:$2 sm:$0xff] %v815_v46  ;;  %828 = vst [vmem:[#allocation7 + $0x60] ss:$2 sm:$0xff] %v774_v47  ;;  %v711_v7 = vsel %vm315_vm3, %v709_v49, %v710_v26 }
 0x1bf   :  { %830 = vst [vmem:[#allocation7 + $0x70] ss:$2 sm:$0xff] %v775_v48  ;;  %860 = vst [vmem:[#allocation7 + $0x61] ss:$2 sm:$0xff] %v806_v50  ;;  %v782_v8 = vadd.f32 %v766_v53, %v750_v51  ;;  %v783_v54 = vadd.f32 %v767_v27, %v751_v52  ;;  %v798_v55 = vmul.f32 0.25, %v711_v7 }
 0x1c1   :  { %v814_v15 = vadd.f32 %v798_v55, %v766_v53  ;;  %844 = vst [vmem:[#allocation7 + $0xe0] ss:$2 sm:$0xff] %v782_v8  ;;  %846 = vst [vmem:[#allocation7 + $0xf0] ss:$2 sm:$0xff] %v783_v54 }
 0x1c3   :  { %876 = vst [vmem:[#allocation7 + $0xe1] ss:$2 sm:$0xff] %v814_v15 }
 0x1c4   :  { %1027 = shalt.err (!%p1024_p6)
}
 0x1c5   :  { %s1028_s12 = scalar_lea.hbm %s1369_s2, 4096 }
 0x1c6   :  { %p1029_p7 = scmp.ne.s32.totalorder %s1369_s2, %s1028_s12  ;;  %p1032_p8 = scmp.lt.u32.totalorder %s1028_s12, %s1369_s2 }
 0x1c8   :  { %p1034_p9 = pnand %p1032_p8, %p1029_p7 }
 0x1ca   :  { %1037 = shalt.err (!%p1034_p9)
}
 0x1cb   :  { %890 = dma.vmem_to_hbm [thread:$0]  %s885_s8, 4096, %s1369_s2, [#allocation4], %s1045_s19, %s1045_s19, %s1046_s20  }
 0x1cc   :  { %1042 = dma.done.wait [#allocation4], 4096  }
 0x1cd   :  { %1043 = vsyncadd [#allocation4], 4294963200 }
 0x1ce   :  { %894 = vsyncpa [#allocation3], 1 }
 0x1cf   :  { %895 = vsyncpa [#allocation6], 1 }
 0x1d0   :  { %896 = vsyncpa [#allocation4], 1 }

</bundles_post_ra>
